<compile_context>
chip_gen: v5e
topology: v5e:2x2
jax: 0.10.0
libtpu: 0.0.40
codegen_flags: <defaults>
</compile_context>

<pallas_src>
import functools

import jax
import jax.numpy as jnp
from jax.experimental import pallas as pl
from jax.experimental.pallas import tpu as pltpu


def _jastrow_kernel(params_ref, d_ref, o_ref, *, n_same, n_pairs):
    """Per-batch-tile Jastrow factor.

    params_ref: SMEM f32[2]        -> [alpha_par, alpha_anti]
    d_ref:      VMEM f32[3, P, TB] -> pair coordinate differences (batch on lanes)
    o_ref:      VMEM f32[1, TB]    -> log_jastrow for this batch tile
    """
    _, P, TB = d_ref.shape
    d = d_ref[...]                                       # (3, P, TB)

    # Pair distance; init from first component (no zeros pass), no max(r2, 0).
    r2 = d[0] * d[0] + d[1] * d[1] + d[2] * d[2]         # (P, TB)
    r = jnp.maximum(jnp.sqrt(r2), 1e-10)                 # torch.clamp(r, min=1e-10)

    a_par = params_ref[0]
    a_anti = params_ref[1]

    # Per-pair coeff/alpha at full (P, TB) rank via iota + scalar selects.
    # Pair ordering: [same-spin (n_same), opposite-spin (n_pairs-n_same), pad].
    pidx = jax.lax.broadcasted_iota(jnp.int32, (P, TB), 0)
    is_par = pidx < n_same
    is_anti = jnp.logical_and(pidx >= n_same, pidx < n_pairs)
    coeff = jnp.where(is_par, -0.25 * a_par * a_par,
                      jnp.where(is_anti, -0.5 * a_anti * a_anti, 0.0))
    alpha = jnp.where(is_par, a_par, jnp.where(is_anti, a_anti, 1.0))

    # Approx reciprocal (EUP) + one Newton-Raphson refinement step.
    denom = alpha + r
    inv = pl.reciprocal(denom, approx=True)
    inv = inv * (2.0 - denom * inv)

    contrib = coeff * inv                                # (P, TB); pads contribute 0
    o_ref[...] = jnp.sum(contrib, axis=0, keepdims=True)  # (1, TB) lane-dense store


@functools.partial(jax.jit, static_argnames=("n_electrons_up", "batch_tile"))
def jastrow_factor(electron_coords, atom_coords, n_electrons_up,
                   alpha_par, alpha_anti, batch_tile=512):
    """Pallas implementation of JastrowFactor.forward.

    electron_coords: f32[B, N, 3]
    atom_coords:     f32[n_atoms, 3]  (unused by the forward pass, kept for parity)
    returns:         f32[B]
    """
    del atom_coords  # not used in the reference forward pass
    B, N, _ = electron_coords.shape
    n_up = n_electrons_up

    # Static upper-triangle pair lists: same-spin first, then opposite-spin.
    pairs_same = [(i, j) for i in range(n_up) for j in range(i + 1, n_up)]
    pairs_same += [(i, j) for i in range(n_up, N) for j in range(i + 1, N)]
    pairs_anti = [(i, j) for i in range(n_up) for j in range(n_up, N)]
    pairs = pairs_same + pairs_anti
    n_same, n_pairs = len(pairs_same), len(pairs)

    if n_pairs == 0:  # N <= 1: reference returns zeros
        return jnp.zeros((B,), jnp.float32)

    P = ((n_pairs + 7) // 8) * 8          # sublane-pad the pair axis
    TB = batch_tile                        # multiple of 128
    n_tiles = pl.cdiv(B, TB)
    B_pad = n_tiles * TB

    # Glue (fused by XLA under jit): static pair gather + diff + re-layout to
    # pair-major [3, P, B_pad] with batch minor (lane axis); one pad for both
    # the pair and batch axes.
    x = electron_coords.astype(jnp.float32)                            # (B, N, 3)
    idx_i = jnp.array([p[0] for p in pairs], jnp.int32)
    idx_j = jnp.array([p[1] for p in pairs], jnp.int32)
    diff = jnp.take(x, idx_i, axis=1) - jnp.take(x, idx_j, axis=1)     # (B, n_pairs, 3)
    d = jnp.transpose(diff, (2, 1, 0))                                 # (3, n_pairs, B)
    d = jnp.pad(d, ((0, 0), (0, P - n_pairs), (0, B_pad - B)))

    params = jnp.array([alpha_par, alpha_anti], dtype=jnp.float32)

    kernel = functools.partial(_jastrow_kernel, n_same=n_same, n_pairs=n_pairs)

    out = pl.pallas_call(
        kernel,
        out_shape=jax.ShapeDtypeStruct((1, B_pad), jnp.float32),
        grid=(n_tiles,),
        in_specs=[
            pl.BlockSpec(memory_space=pltpu.MemorySpace.SMEM),   # alphas
            pl.BlockSpec((3, P, TB), lambda b: (0, 0, b)),       # pair diffs
        ],
        out_specs=pl.BlockSpec((1, TB), lambda b: (0, b)),
        compiler_params=pltpu.CompilerParams(
            dimension_semantics=("parallel",)),                  # v7x: shard tiles across TCs
    )(params, d)

    return out[0, :B]


def _jastrow_reference(electron_coords, atom_coords, n_electrons_up,
                       alpha_par, alpha_anti):
    """Pure-JAX transcription of the PyTorch loops (for verification)."""
    del atom_coords
    B, N, _ = electron_coords.shape
    log_j = jnp.zeros((B,), jnp.float32)
    n_up = n_electrons_up
    if N > 1:
        # same-spin (up-up)
        for i in range(n_up):
            for j in range(i + 1, n_up):
                r = jnp.linalg.norm(electron_coords[:, i] - electron_coords[:, j], axis=1)
                r = jnp.maximum(r, 1e-10)
                log_j = log_j + (-0.25 * alpha_par ** 2 / (alpha_par + r))
        # same-spin (down-down)
        for i in range(n_up, N):
            for j in range(i + 1, N):
                r = jnp.linalg.norm(electron_coords[:, i] - electron_coords[:, j], axis=1)
                r = jnp.maximum(r, 1e-10)
                log_j = log_j + (-0.25 * alpha_par ** 2 / (alpha_par + r))
        # opposite-spin
        for i in range(n_up):
            for j in range(n_up, N):
                r = jnp.linalg.norm(electron_coords[:, i] - electron_coords[:, j], axis=1)
                r = jnp.maximum(r, 1e-10)
                log_j = log_j + (-0.5 * alpha_anti ** 2 / (alpha_anti + r))
    return log_j


if __name__ == "__main__":
    # Module config: n_electrons=8, n_atoms=2, init_scale=0.5
    n_electrons = 8
    n_atoms = 2
    n_electrons_up = 4
    batch = 600          # non-multiple of the 512 tile: exercises padding + 2-step grid
    init_scale = 0.5

    key = jax.random.PRNGKey(0)
    k1, k2 = jax.random.split(key)
    electron_coords = jax.random.normal(k1, (batch, n_electrons, 3), jnp.float32)
    atom_coords = jax.random.normal(k2, (n_atoms, 3), jnp.float32)

    # Parameters (deterministic, as in __init__): alpha_par = alpha_anti = 0.5
    alpha_par = jnp.float32(init_scale)
    alpha_anti = jnp.float32(init_scale)

    out = jastrow_factor(electron_coords, atom_coords, n_electrons_up,
                         alpha_par, alpha_anti)
    out = jax.block_until_ready(out)

    ref = _jastrow_reference(electron_coords, atom_coords, n_electrons_up,
                             alpha_par, alpha_anti)
    assert out.shape == (batch,)
    assert jnp.allclose(out, ref, rtol=1e-5, atol=1e-5), (out, ref)

    print("KERNEL_OK")
</pallas_src>

<mosaic_0001>
module attributes {stable_mosaic.version = 11 : i64} {
  func.func @_jastrow_kernel(%arg0: i32, %arg1: memref<2xf32, #tpu.memory_space<smem>>, %arg2: memref<3x32x512xf32, #tpu.memory_space<vmem>>, %arg3: memref<1x512xf32, #tpu.memory_space<vmem>>) attributes {dimension_semantics = [#tpu.dimension_semantics<parallel>], iteration_bounds = array<i64: 2>, scalar_prefetch = 0 : i64, scratch_operands = 0 : i64, tpu.core_type = #tpu.core_type<tc>, window_params = [{transform_indices = @transform_0, window_bounds = array<i64: 2>}, {transform_indices = @transform_1, window_bounds = array<i64: 3, 32, 512>}, {transform_indices = @transform_2, window_bounds = array<i64: 1, 512>}]} {
    %c0 = arith.constant 0 : index
    %c0_0 = arith.constant 0 : index
    %c0_1 = arith.constant 0 : index
    %0 = vector.load %arg2[%c0, %c0_0, %c0_1] : memref<3x32x512xf32, #tpu.memory_space<vmem>>, vector<3x32x512xf32>
    %1 = vector.extract_strided_slice %0 {offsets = [0, 0, 0], sizes = [1, 32, 512], strides = [1, 1, 1]} : vector<3x32x512xf32> to vector<1x32x512xf32>
    %2 = vector.shape_cast %1 : vector<1x32x512xf32> to vector<32x512xf32>
    %3 = vector.extract_strided_slice %0 {offsets = [0, 0, 0], sizes = [1, 32, 512], strides = [1, 1, 1]} : vector<3x32x512xf32> to vector<1x32x512xf32>
    %4 = vector.shape_cast %3 : vector<1x32x512xf32> to vector<32x512xf32>
    %5 = arith.mulf %2, %4 : vector<32x512xf32>
    %6 = vector.extract_strided_slice %0 {offsets = [1, 0, 0], sizes = [1, 32, 512], strides = [1, 1, 1]} : vector<3x32x512xf32> to vector<1x32x512xf32>
    %7 = vector.shape_cast %6 : vector<1x32x512xf32> to vector<32x512xf32>
    %8 = vector.extract_strided_slice %0 {offsets = [1, 0, 0], sizes = [1, 32, 512], strides = [1, 1, 1]} : vector<3x32x512xf32> to vector<1x32x512xf32>
    %9 = vector.shape_cast %8 : vector<1x32x512xf32> to vector<32x512xf32>
    %10 = arith.mulf %7, %9 : vector<32x512xf32>
    %11 = arith.addf %5, %10 : vector<32x512xf32>
    %12 = vector.extract_strided_slice %0 {offsets = [2, 0, 0], sizes = [1, 32, 512], strides = [1, 1, 1]} : vector<3x32x512xf32> to vector<1x32x512xf32>
    %13 = vector.shape_cast %12 : vector<1x32x512xf32> to vector<32x512xf32>
    %14 = vector.extract_strided_slice %0 {offsets = [2, 0, 0], sizes = [1, 32, 512], strides = [1, 1, 1]} : vector<3x32x512xf32> to vector<1x32x512xf32>
    %15 = vector.shape_cast %14 : vector<1x32x512xf32> to vector<32x512xf32>
    %16 = arith.mulf %13, %15 : vector<32x512xf32>
    %17 = arith.addf %11, %16 : vector<32x512xf32>
    %18 = math.sqrt %17 : vector<32x512xf32>
    %cst = arith.constant 1.000000e-10 : f32
    %19 = vector.broadcast %cst : f32 to vector<32x512xf32>
    %20 = arith.maximumf %18, %19 : vector<32x512xf32>
    %c0_2 = arith.constant 0 : index
    %21 = memref.load %arg1[%c0_2] : memref<2xf32, #tpu.memory_space<smem>>
    %c1 = arith.constant 1 : index
    %22 = memref.load %arg1[%c1] : memref<2xf32, #tpu.memory_space<smem>>
    %23 = tpu.iota {dimensions = array<i32: 0>} : vector<32x512xi32>
    %c12_i32 = arith.constant 12 : i32
    %24 = vector.broadcast %c12_i32 : i32 to vector<32x512xi32>
    %25 = arith.cmpi slt, %23, %24 : vector<32x512xi32>
    %c12_i32_3 = arith.constant 12 : i32
    %26 = vector.broadcast %c12_i32_3 : i32 to vector<32x512xi32>
    %27 = arith.cmpi sge, %23, %26 : vector<32x512xi32>
    %c28_i32 = arith.constant 28 : i32
    %28 = vector.broadcast %c28_i32 : i32 to vector<32x512xi32>
    %29 = arith.cmpi slt, %23, %28 : vector<32x512xi32>
    %30 = arith.andi %27, %29 : vector<32x512xi1>
    %cst_4 = arith.constant -2.500000e-01 : f32
    %31 = arith.mulf %cst_4, %21 : f32
    %32 = arith.mulf %31, %21 : f32
    %cst_5 = arith.constant -5.000000e-01 : f32
    %33 = arith.mulf %cst_5, %22 : f32
    %34 = arith.mulf %33, %22 : f32
    %cst_6 = arith.constant 0.000000e+00 : f32
    %35 = vector.broadcast %34 : f32 to vector<32x512xf32>
    %36 = vector.broadcast %cst_6 : f32 to vector<32x512xf32>
    %37 = arith.select %30, %35, %36 : vector<32x512xi1>, vector<32x512xf32>
    %38 = vector.broadcast %32 : f32 to vector<32x512xf32>
    %39 = arith.select %25, %38, %37 : vector<32x512xi1>, vector<32x512xf32>
    %cst_7 = arith.constant 1.000000e+00 : f32
    %40 = vector.broadcast %22 : f32 to vector<32x512xf32>
    %41 = vector.broadcast %cst_7 : f32 to vector<32x512xf32>
    %42 = arith.select %30, %40, %41 : vector<32x512xi1>, vector<32x512xf32>
    %43 = vector.broadcast %21 : f32 to vector<32x512xf32>
    %44 = arith.select %25, %43, %42 : vector<32x512xi1>, vector<32x512xf32>
    %45 = arith.addf %44, %20 : vector<32x512xf32>
    %46 = tpu.reciprocal %45 {approx = true} : vector<32x512xf32> -> vector<32x512xf32>
    %47 = arith.mulf %45, %46 : vector<32x512xf32>
    %cst_8 = arith.constant 2.000000e+00 : f32
    %48 = vector.broadcast %cst_8 : f32 to vector<32x512xf32>
    %49 = arith.subf %48, %47 : vector<32x512xf32>
    %50 = arith.mulf %46, %49 : vector<32x512xf32>
    %51 = arith.mulf %39, %50 : vector<32x512xf32>
    %cst_9 = arith.constant dense<0.000000e+00> : vector<512xf32>
    %52 = vector.multi_reduction <add>, %51, %cst_9 [0] : vector<32x512xf32> to vector<512xf32>
    %53 = vector.shape_cast %52 : vector<512xf32> to vector<1x512xf32>
    %c0_10 = arith.constant 0 : index
    %c0_11 = arith.constant 0 : index
    %54 = vector.load %arg3[%c0_10, %c0_11] : memref<1x512xf32, #tpu.memory_space<vmem>>, vector<1x512xf32>
    tpu.vector_store %arg3[%c0_10, %c0_11], %53 {strides = array<i32>} : memref<1x512xf32, #tpu.memory_space<vmem>>, vector<1x512xf32>,
    return
  }
  func.func @transform_0(%arg0: i32) -> i32 {
    %c0_i32 = arith.constant 0 : i32
    %c0_i32_0 = arith.constant 0 : i32
    return %c0_i32 : i32
  }
  func.func @transform_1(%arg0: i32) -> (i32, i32, i32) {
    %c0_i32 = arith.constant 0 : i32
    %c0_i32_0 = arith.constant 0 : i32
    %c0_i32_1 = arith.constant 0 : i32
    return %c0_i32, %c0_i32_0, %arg0 : i32, i32, i32
  }
  func.func @transform_2(%arg0: i32) -> (i32, i32) {
    %c0_i32 = arith.constant 0 : i32
    %c0_i32_0 = arith.constant 0 : i32
    return %c0_i32, %arg0 : i32, i32
  }
}

</mosaic_0001>

<bundles_post_ra>
// kernel: jastrow_factor.1
= control target key start
LH: loop header
LB: loop body
LE: loop exit
PB: predicated region body
PF: predicated region fallthrough
CT: control target
= control target key end

     0   :  { %7 = vsyncpa [#allocation3], 0  ;;  %s1048_s9 = smov 0   ;;  %s1050_s10 = smov 0   ;;  %s1640_s0 = inlined_call_operand.vmem [shape: f32[2], index: 0, kind: input, shape index: {}]   ;;  %s1641_s1 = inlined_call_operand.vmem [shape: f32[3,32,1024], index: 1, kind: input, shape index: {}]   ;;  %s1642_s2 = inlined_call_operand.vmem [shape: f32[1,1024], index: 2, kind: output, shape index: {}]  }
   0x1   :  { %s1052_s11 = smov 0  }
   0x2 LB: > { %s874_s12 = sadd.s32 4294967295, %s1030_s11   ;;  %s1065_s13 = sadd.s32 1, %s1030_s11   ;;  %s1030_s11 = sphi %s1052_s11, %s1647_s11   ;;  %s1026_s10 = sphi %s1050_s10, %s1646_s10   ;;  %s1022_s9 = sphi %s1048_s9, %s1645_s9  }
   0x3   : > { %s38_s14 = ssub.s32 %s1030_s11, %s1065_s13  ;;  %s41_s15 = sadd.s32 1, %s1026_s10 }
   0x4   : > { %p39_p0 = scmp.eq.s32.totalorder %s38_s14, 0  ;;  %p48_p1 = scmp.ne.s32.totalorder %s1026_s10, %s1022_s9 }
   0x5   : > { %p49_p2 = scmp.eq.s32.totalorder %s1030_s11, 0  ;;  %p876_p3 = scmp.ge.s32.totalorder %s1030_s11, 1 }
   0x6   : > { %s1075_s16 = scalar_select %p39_p0, %s1026_s10, %s41_s15  }
   0x7   : > { %p50_p4 = por %p49_p2, %p48_p1  ;;  %p91_p5 = scmp.lt.s32.totalorder %s1030_s11, 3 }
   0x8   : > { %p1080_p6 = scmp.eq.s32.totalorder %s874_s12, 0  ;;  %s103_s21 = sshll.u32 %s1640_s0, 4  ;;  %s104_s21 = int_to_ptr.vmem [resolvable:$true] %s103_s21 }
   0x9   : > { %p1084_p7 = pnand %p876_p3, %p91_p5  ;;  %s1032_s22 = smov [#allocation2]  }
   0xa   : > { %p878_p10 = scmp.ge.s32.totalorder %s1030_s11, 2 }
   0xb   : > { %p894_p8 = pneg %p1084_p7 }
   0xc   : > { %110 = sbr.rel (%p878_p10) target bundleno = 69 (0x45), region = 20 }
   0xd   : > { %p895_p9 = pnand %p1080_p6, %p894_p8 }
   0xf   : > { %897 = dma.vmem_to_smem (!%p895_p9), %s104_s21, 16, %s1032_s22, [#allocation3]  }
  0x11   : > { %113 = sbr.rel (!%p50_p4) target bundleno = 69 (0x45), region = 24  ;;  %s115_s23 = sand.u32 (%p50_p4), 1, %s1026_s10  }
  0x12   : > { %s887_s24 = sshll.u32 (%p50_p4), %s1030_s11, 5  ;;  %s888_s25 = smul.u32 (%p50_p4), 384, %s115_s23 }
  0x13   : > { %s1101_s28 = scalar_lea.vmem (%p50_p4), %s1641_s1, %s887_s24 }
  0x14   : > { %v133_v0 = vld [vmem:[%s1101_s28] sm:$0xff] (%p50_p4)  ;;  %v135_v1 = vld [vmem:[%s1101_s28 + $0x8] sm:$0xff] (%p50_p4)  ;;  %v137_v2 = vld [vmem:[%s1101_s28 + $0x10] sm:$0xff] (%p50_p4)  ;;  %s1106_s29 = scalar_lea.vmem (%p50_p4), [#allocation4], %s888_s25 }
  0x15   : > { %134 = vst [vmem:[%s1106_s29] sm:$0xff] (%p50_p4), %v133_v0  ;;  %v139_v3 = vld [vmem:[%s1101_s28 + $0x18] sm:$0xff] (%p50_p4)  ;;  %v141_v4 = vld [vmem:[%s1101_s28 + $0x40] sm:$0xff] (%p50_p4)  ;;  %v143_v5 = vld [vmem:[%s1101_s28 + $0x48] sm:$0xff] (%p50_p4) }
  0x16   : > { %136 = vst [vmem:[%s1106_s29 + $0x8] sm:$0xff] %v135_v1  ;;  %v145_v6 = vld [vmem:[%s1101_s28 + $0x50] sm:$0xff]  ;;  %v147_v7 = vld [vmem:[%s1101_s28 + $0x58] sm:$0xff]  ;;  %v149_v8 = vld [vmem:[%s1101_s28 + $0x80] sm:$0xff] }
  0x17   : > { %138 = vst [vmem:[%s1106_s29 + $0x10] sm:$0xff] %v137_v2  ;;  %v151_v9 = vld [vmem:[%s1101_s28 + $0x88] sm:$0xff]  ;;  %v153_v10 = vld [vmem:[%s1101_s28 + $0x90] sm:$0xff]  ;;  %v155_v11 = vld [vmem:[%s1101_s28 + $0x98] sm:$0xff] }
  0x18   : > { %140 = vst [vmem:[%s1106_s29 + $0x18] sm:$0xff] %v139_v3  ;;  %v157_v12 = vld [vmem:[%s1101_s28 + $0xc0] sm:$0xff]  ;;  %v159_v13 = vld [vmem:[%s1101_s28 + $0xc8] sm:$0xff]  ;;  %v161_v14 = vld [vmem:[%s1101_s28 + $0xd0] sm:$0xff] }
  0x19   : > { %142 = vst [vmem:[%s1106_s29 + $0x20] sm:$0xff] %v141_v4  ;;  %v163_v15 = vld [vmem:[%s1101_s28 + $0xd8] sm:$0xff]  ;;  %v165_v16 = vld [vmem:[%s1101_s28 + $0x100] sm:$0xff]  ;;  %v167_v17 = vld [vmem:[%s1101_s28 + $0x108] sm:$0xff] }
  0x1a   : > { %144 = vst [vmem:[%s1106_s29 + $0x28] sm:$0xff] %v143_v5  ;;  %v169_v18 = vld [vmem:[%s1101_s28 + $0x110] sm:$0xff]  ;;  %v171_v19 = vld [vmem:[%s1101_s28 + $0x118] sm:$0xff]  ;;  %v173_v20 = vld [vmem:[%s1101_s28 + $0x140] sm:$0xff] }
  0x1b   : > { %146 = vst [vmem:[%s1106_s29 + $0x30] sm:$0xff] %v145_v6  ;;  %v175_v21 = vld [vmem:[%s1101_s28 + $0x148] sm:$0xff]  ;;  %v177_v22 = vld [vmem:[%s1101_s28 + $0x150] sm:$0xff]  ;;  %v179_v23 = vld [vmem:[%s1101_s28 + $0x158] sm:$0xff] }
  0x1c   : > { %148 = vst [vmem:[%s1106_s29 + $0x38] sm:$0xff] %v147_v7  ;;  %v181_v24 = vld [vmem:[%s1101_s28 + $0x180] sm:$0xff]  ;;  %v183_v25 = vld [vmem:[%s1101_s28 + $0x188] sm:$0xff]  ;;  %v185_v26 = vld [vmem:[%s1101_s28 + $0x190] sm:$0xff] }
  0x1d   : > { %150 = vst [vmem:[%s1106_s29 + $0x40] sm:$0xff] %v149_v8  ;;  %v187_v27 = vld [vmem:[%s1101_s28 + $0x198] sm:$0xff]  ;;  %v189_v28 = vld [vmem:[%s1101_s28 + $0x1c0] sm:$0xff]  ;;  %v191_v29 = vld [vmem:[%s1101_s28 + $0x1c8] sm:$0xff] }
  0x1e   : > { %152 = vst [vmem:[%s1106_s29 + $0x48] sm:$0xff] %v151_v9  ;;  %v193_v30 = vld [vmem:[%s1101_s28 + $0x1d0] sm:$0xff]  ;;  %v195_v31 = vld [vmem:[%s1101_s28 + $0x1d8] sm:$0xff]  ;;  %v197_v32 = vld [vmem:[%s1101_s28 + $0x200] sm:$0xff] }
  0x1f   : > { %154 = vst [vmem:[%s1106_s29 + $0x50] sm:$0xff] %v153_v10  ;;  %v199_v33 = vld [vmem:[%s1101_s28 + $0x208] sm:$0xff]  ;;  %v201_v34 = vld [vmem:[%s1101_s28 + $0x210] sm:$0xff]  ;;  %v203_v35 = vld [vmem:[%s1101_s28 + $0x218] sm:$0xff] }
  0x20   : > { %156 = vst [vmem:[%s1106_s29 + $0x58] sm:$0xff] %v155_v11  ;;  %v205_v36 = vld [vmem:[%s1101_s28 + $0x240] sm:$0xff]  ;;  %v207_v37 = vld [vmem:[%s1101_s28 + $0x248] sm:$0xff]  ;;  %v209_v38 = vld [vmem:[%s1101_s28 + $0x250] sm:$0xff] }
  0x21   : > { %158 = vst [vmem:[%s1106_s29 + $0x60] sm:$0xff] %v157_v12  ;;  %v211_v39 = vld [vmem:[%s1101_s28 + $0x258] sm:$0xff]  ;;  %v213_v40 = vld [vmem:[%s1101_s28 + $0x280] sm:$0xff]  ;;  %v215_v41 = vld [vmem:[%s1101_s28 + $0x288] sm:$0xff] }
  0x22   : > { %160 = vst [vmem:[%s1106_s29 + $0x68] sm:$0xff] %v159_v13  ;;  %v217_v42 = vld [vmem:[%s1101_s28 + $0x290] sm:$0xff]  ;;  %v219_v43 = vld [vmem:[%s1101_s28 + $0x298] sm:$0xff]  ;;  %v221_v44 = vld [vmem:[%s1101_s28 + $0x2c0] sm:$0xff] }
  0x23   : > { %162 = vst [vmem:[%s1106_s29 + $0x70] sm:$0xff] %v161_v14  ;;  %v223_v45 = vld [vmem:[%s1101_s28 + $0x2c8] sm:$0xff]  ;;  %v225_v46 = vld [vmem:[%s1101_s28 + $0x2d0] sm:$0xff]  ;;  %v227_v47 = vld [vmem:[%s1101_s28 + $0x2d8] sm:$0xff] }
  0x24   : > { %164 = vst [vmem:[%s1106_s29 + $0x78] sm:$0xff] %v163_v15 }
  0x25   : > { %166 = vst [vmem:[%s1106_s29 + $0x80] sm:$0xff] %v165_v16 }
  0x26   : > { %168 = vst [vmem:[%s1106_s29 + $0x88] sm:$0xff] %v167_v17 }
  0x27   : > { %170 = vst [vmem:[%s1106_s29 + $0x90] sm:$0xff] %v169_v18 }
  0x28   : > { %172 = vst [vmem:[%s1106_s29 + $0x98] sm:$0xff] %v171_v19 }
  0x29   : > { %174 = vst [vmem:[%s1106_s29 + $0xa0] sm:$0xff] %v173_v20 }
  0x2a   : > { %176 = vst [vmem:[%s1106_s29 + $0xa8] sm:$0xff] %v175_v21 }
  0x2b   : > { %178 = vst [vmem:[%s1106_s29 + $0xb0] sm:$0xff] %v177_v22 }
  0x2c   : > { %180 = vst [vmem:[%s1106_s29 + $0xb8] sm:$0xff] %v179_v23 }
  0x2d   : > { %182 = vst [vmem:[%s1106_s29 + $0xc0] sm:$0xff] %v181_v24 }
  0x2e   : > { %184 = vst [vmem:[%s1106_s29 + $0xc8] sm:$0xff] %v183_v25 }
  0x2f   : > { %186 = vst [vmem:[%s1106_s29 + $0xd0] sm:$0xff] %v185_v26 }
  0x30   : > { %188 = vst [vmem:[%s1106_s29 + $0xd8] sm:$0xff] %v187_v27 }
  0x31   : > { %190 = vst [vmem:[%s1106_s29 + $0xe0] sm:$0xff] %v189_v28 }
  0x32   : > { %192 = vst [vmem:[%s1106_s29 + $0xe8] sm:$0xff] %v191_v29 }
  0x33   : > { %194 = vst [vmem:[%s1106_s29 + $0xf0] sm:$0xff] %v193_v30 }
  0x34   : > { %196 = vst [vmem:[%s1106_s29 + $0xf8] sm:$0xff] %v195_v31 }
  0x35   : > { %198 = vst [vmem:[%s1106_s29 + $0x100] sm:$0xff] %v197_v32 }
  0x36   : > { %200 = vst [vmem:[%s1106_s29 + $0x108] sm:$0xff] %v199_v33 }
  0x37   : > { %202 = vst [vmem:[%s1106_s29 + $0x110] sm:$0xff] %v201_v34 }
  0x38   : > { %204 = vst [vmem:[%s1106_s29 + $0x118] sm:$0xff] %v203_v35 }
  0x39   : > { %206 = vst [vmem:[%s1106_s29 + $0x120] sm:$0xff] %v205_v36 }
  0x3a   : > { %208 = vst [vmem:[%s1106_s29 + $0x128] sm:$0xff] %v207_v37 }
  0x3b   : > { %210 = vst [vmem:[%s1106_s29 + $0x130] sm:$0xff] %v209_v38 }
  0x3c   : > { %212 = vst [vmem:[%s1106_s29 + $0x138] sm:$0xff] %v211_v39 }
  0x3d   : > { %214 = vst [vmem:[%s1106_s29 + $0x140] sm:$0xff] %v213_v40 }
  0x3e   : > { %216 = vst [vmem:[%s1106_s29 + $0x148] sm:$0xff] %v215_v41 }
  0x3f   : > { %218 = vst [vmem:[%s1106_s29 + $0x150] sm:$0xff] %v217_v42 }
  0x40   : > { %220 = vst [vmem:[%s1106_s29 + $0x158] sm:$0xff] %v219_v43 }
  0x41   : > { %222 = vst [vmem:[%s1106_s29 + $0x160] sm:$0xff] %v221_v44 }
  0x42   : > { %224 = vst [vmem:[%s1106_s29 + $0x168] sm:$0xff] %v223_v45 }
  0x43   : > { %226 = vst [vmem:[%s1106_s29 + $0x170] sm:$0xff] %v225_v46 }
  0x44   : > { %228 = vst [vmem:[%s1106_s29 + $0x178] sm:$0xff] %v227_v47 }
  0x45 PF: > { %237 = sbr.rel (%p1084_p7) target bundleno = 206 (0xce), region = 47 }
  0x4a   : > { %1017 = dma.done.wait (%p1080_p6), [#allocation3], 16  }
  0x4b   : > { %1019 = vsyncadd (%p1080_p6), [#allocation3], 4294967280  ;;  %s245_s30 = sand.u32 1, %s1022_s9  }
  0x4c   : > { %s889_s3 = smul.u32 384, %s245_s30 }
  0x4e   : > { %s1208_s4 = scalar_lea.vmem [#allocation4], %s889_s3 }
  0x4f   : > { %251 = sfence }
  0x50   : > { %v272_v48 = vld [vmem:[%s1208_s4] sm:$0xff]  ;;  %v273_v50 = vld [vmem:[%s1208_s4 + $0x8] sm:$0xff]  ;;  %v274_v52 = vld [vmem:[%s1208_s4 + $0x10] sm:$0xff]  ;;  %s1487_s5 = sld [smem:[#allocation2]]  ;;  %s883_s15 = sshll.u32 %s874_s12, 2 }
  0x51   : > { %v288_v49 = vld [vmem:[%s1208_s4 + $0x80] sm:$0xff]  ;;  %v289_v51 = vld [vmem:[%s1208_s4 + $0x88] sm:$0xff]  ;;  %v290_v53 = vld [vmem:[%s1208_s4 + $0x90] sm:$0xff]  ;;  %v320_v56 = vmul.f32 %v272_v48, %v272_v48  ;;  %v321_v61 = vmul.f32 %v273_v50, %v273_v50  ;;  %v322_v2 = vmul.f32 %v274_v52, %v274_v52  ;;  %s1499_s6 = sld [smem:[#allocation2 + $0x1]]  ;;  %p268_p11 = scmp.lt.s32.totalorder %s883_s15, 7 }
  0x52   : > { %v275_v54 = vld [vmem:[%s1208_s4 + $0x18] sm:$0xff]  ;;  %v336_v57 = vmul.f32 %v288_v49, %v288_v49  ;;  %v276_v58 = vld [vmem:[%s1208_s4 + $0x20] sm:$0xff]  ;;  %v337_v62 = vmul.f32 %v289_v51, %v289_v51  ;;  %v277_v63 = vld [vmem:[%s1208_s4 + $0x28] sm:$0xff]  ;;  %v338_v3 = vmul.f32 %v290_v53, %v290_v53 }
  0x53   : > { %v291_v55 = vld [vmem:[%s1208_s4 + $0x98] sm:$0xff]  ;;  %v292_v59 = vld [vmem:[%s1208_s4 + $0xa0] sm:$0xff]  ;;  %v293_v0 = vld [vmem:[%s1208_s4 + $0xa8] sm:$0xff]  ;;  %v323_v7 = vmul.f32 %v275_v54, %v275_v54  ;;  %v324_v10 = vmul.f32 %v276_v58, %v276_v58  ;;  %v325_v16 = vmul.f32 %v277_v63, %v277_v63  ;;  %s1649_s15 = smov (!%p268_p11, %s883_s15), 7 }
  0x54   : > { %v304_v60 = vld [vmem:[%s1208_s4 + $0x100] sm:$0xff]  ;;  %v305_v1 = vld [vmem:[%s1208_s4 + $0x108] sm:$0xff]  ;;  %v278_v4 = vld [vmem:[%s1208_s4 + $0x30] sm:$0xff]  ;;  %v339_v8 = vmul.f32 %v291_v55, %v291_v55  ;;  %v340_v11 = vmul.f32 %v292_v59, %v292_v59  ;;  %v352_v12 = vadd.f32 %v336_v57, %v320_v56  ;;  %v341_v17 = vmul.f32 %v293_v0, %v293_v0  ;;  %s270_s17 = scalar_lea.vmem %s1642_s2, %s1649_s15 }
  0x55   : > { %v294_v5 = vld [vmem:[%s1208_s4 + $0xb0] sm:$0xff]  ;;  %v307_v9 = vld [vmem:[%s1208_s4 + $0x118] sm:$0xff]  ;;  %v368_v13 = vmul.f32 %v304_v60, %v304_v60  ;;  %v308_v15 = vld [vmem:[%s1208_s4 + $0x120] sm:$0xff]  ;;  %v353_v18 = vadd.f32 %v337_v62, %v321_v61  ;;  %v369_v19 = vmul.f32 %v305_v1, %v305_v1  ;;  %v326_v22 = vmul.f32 %v278_v4, %v278_v4 }
  0x56   : > { %v306_v6 = vld [vmem:[%s1208_s4 + $0x110] sm:$0xff]  ;;  %v279_v14 = vld [vmem:[%s1208_s4 + $0x38] sm:$0xff]  ;;  %v309_v21 = vld [vmem:[%s1208_s4 + $0x128] sm:$0xff]  ;;  %v342_v23 = vmul.f32 %v294_v5, %v294_v5  ;;  %v354_v24 = vadd.f32 %v338_v3, %v322_v2  ;;  %v355_v27 = vadd.f32 %v339_v8, %v323_v7  ;;  %v371_v28 = vmul.f32 %v307_v9, %v307_v9  ;;  %s631_s8 = smul.f32 -0.25, %s1487_s5 }
  0x57   : > { %v295_v20 = vld [vmem:[%s1208_s4 + $0xb8] sm:$0xff]  ;;  %v370_v25 = vmul.f32 %v306_v6, %v306_v6  ;;  %v310_v26 = vld [vmem:[%s1208_s4 + $0x130] sm:$0xff]  ;;  %v327_v29 = vmul.f32 %v279_v14, %v279_v14  ;;  %v356_v30 = vadd.f32 %v340_v11, %v324_v10  ;;  %v372_v31 = vmul.f32 %v308_v15, %v308_v15  ;;  %v280_v41 = vld [vmem:[%s1208_s4 + $0x40] sm:$0xff]  ;;  %s633_s7 = smul.f32 -0.5, %s1499_s6 }
  0x58   : > { %v1233_v32 = vadd.f32 %v368_v13, %v352_v12  ;;  %v343_v33 = vmul.f32 %v295_v20, %v295_v20  ;;  %v357_v34 = vadd.f32 %v341_v17, %v325_v16  ;;  %v373_v35 = vmul.f32 %v309_v21, %v309_v21  ;;  %v311_v37 = vld [vmem:[%s1208_s4 + $0x138] sm:$0xff]  ;;  %v296_v42 = vld [vmem:[%s1208_s4 + $0xc0] sm:$0xff]  ;;  %v281_v44 = vld [vmem:[%s1208_s4 + $0x48] sm:$0xff]  ;;  %s632_s14 = smul.f32 %s631_s8, %s1487_s5 }
  0x59   : > { %v1235_v36 = vadd.f32 %v369_v19, %v353_v18  ;;  %v358_v38 = vadd.f32 %v342_v23, %v326_v22  ;;  %v374_v39 = vmul.f32 %v310_v26, %v310_v26  ;;  %v1238_v40 = vadd.f32 %v370_v25, %v354_v24  ;;  %v282_v45 = vld [vmem:[%s1208_s4 + $0x50] sm:$0xff]  ;;  %v297_v46 = vld [vmem:[%s1208_s4 + $0xc8] sm:$0xff]  ;;  %v283_v48 = vld [vmem:[%s1208_s4 + $0x58] sm:$0xff]  ;;  %s634_s9 = smul.f32 %s1499_s6, %s633_s7 }
  0x5a   : > { %v1242_v43 = vadd.f32 %v371_v28, %v355_v27  ;;  %v1247_v47 = vadd.f32 %v372_v31, %v356_v30  ;;  %925 = vrsqrt.f32 %v1233_v32  ;;  %v284_v49 = vld [vmem:[%s1208_s4 + $0x60] sm:$0xff]  ;;  %v285_v50 = vld [vmem:[%s1208_s4 + $0x68] sm:$0xff]  ;;  %v359_v51 = vadd.f32 %v343_v33, %v327_v29  ;;  %v298_v54 = vld [vmem:[%s1208_s4 + $0xd0] sm:$0xff] }
  0x5b   : > { %v375_v52 = vmul.f32 %v311_v37, %v311_v37  ;;  %v1253_v53 = vadd.f32 %v373_v35, %v357_v34  ;;  %927 = vrsqrt.f32 %v1235_v36  ;;  %v299_v55 = vld [vmem:[%s1208_s4 + $0xd8] sm:$0xff]  ;;  %v328_v56 = vmul.f32 %v280_v41, %v280_v41  ;;  %v300_v59 = vld [vmem:[%s1208_s4 + $0xe0] sm:$0xff]  ;;  %v286_v0 = vld [vmem:[%s1208_s4 + $0x70] sm:$0xff] }
  0x5c   : > { %v344_v57 = vmul.f32 %v296_v42, %v296_v42  ;;  %v1258_v58 = vadd.f32 %v374_v39, %v358_v38  ;;  %929 = vrsqrt.f32 %v1238_v40  ;;  %v312_v60 = vld [vmem:[%s1208_s4 + $0x140] sm:$0xff]  ;;  %v329_v61 = vmul.f32 %v281_v44, %v281_v44  ;;  %v301_v1 = vld [vmem:[%s1208_s4 + $0xe8] sm:$0xff]  ;;  %v287_v6 = vld [vmem:[%s1208_s4 + $0x78] sm:$0xff] }
  0x5d   : > { %v330_v62 = vmul.f32 %v282_v45, %v282_v45  ;;  %v345_v63 = vmul.f32 %v297_v46, %v297_v46  ;;  %931 = vrsqrt.f32 %v1242_v43  ;;  %v313_v2 = vld [vmem:[%s1208_s4 + $0x148] sm:$0xff]  ;;  %v331_v3 = vmul.f32 %v283_v48, %v283_v48  ;;  %v302_v7 = vld [vmem:[%s1208_s4 + $0xf0] sm:$0xff]  ;;  %v303_v8 = vld [vmem:[%s1208_s4 + $0xf8] sm:$0xff] }
  0x5e   : > { %v332_v4 = vmul.f32 %v284_v49, %v284_v49  ;;  %v333_v5 = vmul.f32 %v285_v50, %v285_v50  ;;  %933 = vrsqrt.f32 %v1247_v47  ;;  %v346_v9 = vmul.f32 %v298_v54, %v298_v54  ;;  %v314_v27 = vld [vmem:[%s1208_s4 + $0x150] sm:$0xff]  ;;  %v315_v28 = vld [vmem:[%s1208_s4 + $0x158] sm:$0xff]  ;;  %v316_v41 = vld [vmem:[%s1208_s4 + $0x160] sm:$0xff] }
  0x5f   : > { %v347_v10 = vmul.f32 %v299_v55, %v299_v55  ;;  %v1271_v11 = vadd.f32 %v375_v52, %v359_v51  ;;  %935 = vrsqrt.f32 %v1253_v53  ;;  %v348_v13 = vmul.f32 %v300_v59, %v300_v59  ;;  %v317_v49 = vld [vmem:[%s1208_s4 + $0x168] sm:$0xff]  ;;  %v318_v50 = vld [vmem:[%s1208_s4 + $0x170] sm:$0xff] }
  0x60   : > { %v1274_v12 = vpop.eup %925  ;;  %v360_v14 = vadd.f32 %v344_v57, %v328_v56  ;;  %v376_v15 = vmul.f32 %v312_v60, %v312_v60  ;;  %937 = vrsqrt.f32 %v1258_v58  ;;  %v349_v17 = vmul.f32 %v301_v1, %v301_v1  ;;  %v319_v56 = vld [vmem:[%s1208_s4 + $0x178] sm:$0xff] }
  0x61   : > { %v1277_v16 = vpop.eup %927  ;;  %v361_v18 = vadd.f32 %v345_v63, %v329_v61  ;;  %v377_v19 = vmul.f32 %v313_v2, %v313_v2  ;;  %v401_v20 = vmul.f32 %v1274_v12, %v1233_v32  ;;  %v334_v22 = vmul.f32 %v286_v0, %v286_v0 }
  0x62   : > { %v1281_v21 = vpop.eup %929  ;;  %v335_v23 = vmul.f32 %v287_v6, %v287_v6  ;;  %v350_v24 = vmul.f32 %v302_v7, %v302_v7  ;;  %v351_v25 = vmul.f32 %v303_v8, %v303_v8  ;;  %v413_v30 = vmul.f32 %v1277_v16, %v1235_v36 }
  0x63   : > { %v1283_v26 = vpop.eup %931  ;;  %v402_v29 = vmul.f32 %v1274_v12, %v401_v20  ;;  %v425_v31 = vmul.f32 %v1281_v21, %v1238_v40  ;;  %939 = vrsqrt.f32 %v1271_v11  ;;  %v362_v34 = vadd.f32 %v346_v9, %v330_v62 }
  0x64   : > { %v1293_v33 = vpop.eup %933  ;;  %v363_v35 = vadd.f32 %v347_v10, %v331_v3  ;;  %v1295_v37 = vadd.f32 %v376_v15, %v360_v14  ;;  %v437_v38 = vmul.f32 %v1283_v26, %v1242_v43  ;;  %v364_v42 = vadd.f32 %v348_v13, %v332_v4 }
  0x65   : > { %v1299_v39 = vpop.eup %935  ;;  %v365_v44 = vadd.f32 %v349_v17, %v333_v5  ;;  %v1302_v45 = vadd.f32 %v377_v19, %v361_v18  ;;  %v449_v46 = vmul.f32 %v1293_v33, %v1247_v47  ;;  %v366_v51 = vadd.f32 %v350_v24, %v334_v22 }
  0x66   : > { %v1306_v48 = vpop.eup %937  ;;  %v378_v52 = vmul.f32 %v314_v27, %v314_v27  ;;  %v379_v54 = vmul.f32 %v315_v28, %v315_v28  ;;  %v461_v55 = vmul.f32 %v1299_v39, %v1253_v53  ;;  %v403_v57 = vmul.f32 0.5, %v402_v29 }
  0x67   : > { %v414_v59 = vmul.f32 %v1277_v16, %v413_v30  ;;  %v426_v60 = vmul.f32 %v1281_v21, %v425_v31  ;;  %v473_v61 = vmul.f32 %v1306_v48, %v1258_v58  ;;  %v380_v62 = vmul.f32 %v316_v41, %v316_v41 }
  0x68   : > { %v438_v63 = vmul.f32 %v1283_v26, %v437_v38  ;;  %v450_v0 = vmul.f32 %v1293_v33, %v449_v46  ;;  %941 = vrsqrt.f32 %v1295_v37  ;;  %v381_v2 = vmul.f32 %v317_v49, %v317_v49 }
  0x69   : > { %v1320_v1 = vpop.eup %939  ;;  %v382_v3 = vmul.f32 %v318_v50, %v318_v50  ;;  %v462_v4 = vmul.f32 %v1299_v39, %v461_v55  ;;  %943 = vrsqrt.f32 %v1302_v45  ;;  %v367_v5 = vadd.f32 %v351_v25, %v335_v23 }
  0x6a   : > { %v383_v6 = vmul.f32 %v319_v56, %v319_v56  ;;  %v1324_v7 = vadd.f32 %v378_v52, %v362_v34  ;;  %v404_v8 = vsub.f32 1.5, %v403_v57  ;;  %v415_v9 = vmul.f32 0.5, %v414_v59 }
  0x6b   : > { %v427_v10 = vmul.f32 0.5, %v426_v60  ;;  %v474_v13 = vmul.f32 %v1306_v48, %v473_v61  ;;  %v1327_v14 = vadd.f32 %v379_v54, %v363_v35  ;;  %v439_v15 = vmul.f32 0.5, %v438_v63 }
  0x6c   : > { %v451_v17 = vmul.f32 0.5, %v450_v0  ;;  %v485_v18 = vmul.f32 %v1320_v1, %v1271_v11  ;;  %v1331_v19 = vadd.f32 %v380_v62, %v364_v42  ;;  %v1333_v20 = vadd.f32 %v381_v2, %v365_v44 }
  0x6d   : > { %v1335_v22 = vadd.f32 %v382_v3, %v366_v51  ;;  %v463_v23 = vmul.f32 0.5, %v462_v4  ;;  %v1339_v25 = vadd.f32 %v383_v6, %v367_v5  ;;  %vm407_vm0 = vcmp.eq.f32.partialorder %v1233_v32, inf }
  0x6e   : > { %v1337_v24 = vpop.eup %941  ;;  %v410_v27 = vand.u32 2147483648, %v1233_v32  ;;  %v422_v28 = vand.u32 2147483648, %v1235_v36  ;;  %v405_v30 = vmul.f32 %v1274_v12, %v404_v8  ;;  %vm409_vm1 = vcmp.eq.f32.partialorder %v1233_v32, 0.0 }
  0x6f   : > { %v1344_v29 = vpop.eup %943  ;;  %v416_v31 = vsub.f32 1.5, %v415_v9  ;;  %v428_v34 = vsub.f32 1.5, %v427_v10  ;;  %v475_v35 = vmul.f32 0.5, %v474_v13  ;;  %vm419_vm2 = vcmp.eq.f32.partialorder %v1235_v36, inf }
  0x70   : > { %vm431_vm3 = vcmp.eq.f32.partialorder %v1238_v40, inf  ;;  %v440_v38 = vsub.f32 1.5, %v439_v15  ;;  %v452_v41 = vsub.f32 1.5, %v451_v17  ;;  %v486_v42 = vmul.f32 %v1320_v1, %v485_v18 }
  0x71   : > { %v434_v44 = vand.u32 2147483648, %v1238_v40  ;;  %vm443_vm4 = vcmp.eq.f32.partialorder %v1242_v43, inf  ;;  %v464_v46 = vsub.f32 1.5, %v463_v23  ;;  %v497_v12 = vmul.f32 %v1337_v24, %v1295_v37 }
  0x72   : > { %v446_v49 = vand.u32 2147483648, %v1242_v43  ;;  %vm455_vm5 = vcmp.eq.f32.partialorder %v1247_v47, inf  ;;  %v458_v50 = vand.u32 2147483648, %v1247_v47  ;;  %v509_v51 = vmul.f32 %v1344_v29, %v1302_v45 }
  0x73   : > { %v406_v52 = vmul.f32 %v405_v30, %v1233_v32  ;;  %v417_v54 = vmul.f32 %v1277_v16, %v416_v31  ;;  %vm421_vm6 = vcmp.eq.f32.partialorder %v1235_v36, 0.0  ;;  %v429_v55 = vmul.f32 %v1281_v21, %v428_v34 }
  0x74   : > { %vm433_vm7 = vcmp.eq.f32.partialorder %v1238_v40, 0.0  ;;  %v476_v56 = vsub.f32 1.5, %v475_v35  ;;  %v441_v57 = vmul.f32 %v1283_v26, %v440_v38  ;;  %vm445_vm8 = vcmp.eq.f32.partialorder %v1242_v43, 0.0 }
  0x75   : > { %v453_v59 = vmul.f32 %v1293_v33, %v452_v41  ;;  %vm467_vm9 = vcmp.eq.f32.partialorder %v1253_v53, inf  ;;  %v487_v60 = vmul.f32 0.5, %v486_v42  ;;  %vm457_vm10 = vcmp.eq.f32.partialorder %v1247_v47, 0.0 }
  0x76   : > { %v465_v16 = vmul.f32 %v1299_v39, %v464_v46  ;;  %vm469_vm11 = vcmp.eq.f32.partialorder %v1253_v53, 0.0  ;;  %v498_v21 = vmul.f32 %v1337_v24, %v497_v12  ;;  %945 = vrsqrt.f32 %v1324_v7 }
  0x77   : > { %v470_v61 = vand.u32 2147483648, %v1253_v53  ;;  %vm479_vm12 = vcmp.eq.f32.partialorder %v1258_v58, inf  ;;  %v510_v26 = vmul.f32 %v1344_v29, %v509_v51  ;;  %947 = vrsqrt.f32 %v1327_v14 }
  0x78   : > { %v408_v33 = vsel %vm407_vm0, %v1233_v32, %v406_v52  ;;  %v418_v39 = vmul.f32 %v417_v54, %v1235_v36  ;;  %v430_v62 = vmul.f32 %v429_v55, %v1238_v40  ;;  %v477_v63 = vmul.f32 %v1306_v48, %v476_v56 }
  0x79   : > { %vm481_vm13 = vcmp.eq.f32.partialorder %v1258_v58, 0.0  ;;  %v442_v0 = vmul.f32 %v441_v57, %v1242_v43  ;;  %v454_v2 = vmul.f32 %v453_v59, %v1247_v47  ;;  %v488_v3 = vsub.f32 1.5, %v487_v60 }
  0x7a   : > { %949 = vrsqrt.f32 %v1331_v19  ;;  %v466_v4 = vmul.f32 %v465_v16, %v1253_v53  ;;  %v482_v5 = vand.u32 2147483648, %v1258_v58  ;;  %v494_v6 = vand.u32 2147483648, %v1271_v11 }
  0x7b   : > { %v499_v8 = vmul.f32 0.5, %v498_v21  ;;  %v1393_v9 = vsel %vm409_vm1, %v410_v27, %v408_v33  ;;  %vm491_vm14 = vcmp.eq.f32.partialorder %v1271_v11, inf  ;;  %v506_v48 = vand.u32 2147483648, %v1295_v37 }
  0x7c   : > { %v511_v10 = vmul.f32 0.5, %v510_v26  ;;  %951 = vrsqrt.f32 %v1333_v20  ;;  %v946_v13 = vpop.eup %945  ;;  %v420_v15 = vsel %vm419_vm2, %v1235_v36, %v418_v39  ;;  %v432_v17 = vsel %vm431_vm3, %v1238_v40, %v430_v62 }
  0x7d   : > { %v478_v32 = vmul.f32 %v477_v63, %v1258_v58  ;;  %953 = vrsqrt.f32 %v1335_v22  ;;  %v948_v18 = vpop.eup %947  ;;  %v444_v23 = vsel %vm443_vm4, %v1242_v43, %v442_v0  ;;  %v456_v27 = vsel %vm455_vm5, %v1247_v47, %v454_v2 }
  0x7e   : > { %v489_v30 = vmul.f32 %v1320_v1, %v488_v3  ;;  %v521_v31 = vmul.f32 %v946_v13, %v1324_v7  ;;  %v468_v34 = vsel %vm467_vm9, %v1253_v53, %v466_v4  ;;  %v500_v35 = vsub.f32 1.5, %v499_v8 }
  0x7f   : > { %v533_v38 = vmul.f32 %v948_v18, %v1327_v14  ;;  %955 = vrsqrt.f32 %v1339_v25  ;;  %v1425_v42 = vsel %vm421_vm6, %v422_v28, %v420_v15  ;;  %v1431_v1 = vsel %vm433_vm7, %v434_v44, %v432_v17 }
  0x80   : > { %v1419_v41 = vpop.eup %949  ;;  %vm493_vm15 = vcmp.eq.f32.partialorder %v1271_v11, 0.0  ;;  %v512_v46 = vsub.f32 1.5, %v511_v10  ;;  %v522_v12 = vmul.f32 %v946_v13, %v521_v31  ;;  %v1438_v51 = vsel %vm445_vm8, %v446_v49, %v444_v23 }
  0x81   : > { %v480_v36 = vsel %vm479_vm12, %v1258_v58, %v478_v32  ;;  %vm503_vm0 = vcmp.eq.f32.partialorder %v1295_v37, inf  ;;  %vm515_vm1 = vcmp.eq.f32.partialorder %v1302_v45, inf  ;;  %v534_v40 = vmul.f32 %v948_v18, %v533_v38 }
  0x82   : > { %v545_v28 = vmul.f32 %v1419_v41, %v1331_v19  ;;  %v952_v44 = vpop.eup %951  ;;  %v1451_v43 = vsel %vm457_vm10, %v458_v50, %v456_v27  ;;  %v1455_v49 = vsel %vm469_vm11, %v470_v61, %v468_v34  ;;  %v490_v52 = vmul.f32 %v489_v30, %v1271_v11 }
  0x83   : > { %v523_v54 = vmul.f32 0.5, %v522_v12  ;;  %v1458_v55 = vpop.eup %953  ;;  %v501_v56 = vmul.f32 %v1337_v24, %v500_v35  ;;  %v535_v57 = vmul.f32 0.5, %v534_v40  ;;  %v557_v60 = vmul.f32 %v952_v44, %v1333_v20 }
  0x84   : > { %v546_v59 = vmul.f32 %v1419_v41, %v545_v28  ;;  %v1465_v47 = vsel %vm481_vm13, %v482_v5, %v480_v36  ;;  %vm505_vm2 = vcmp.eq.f32.partialorder %v1295_v37, 0.0  ;;  %v513_v53 = vmul.f32 %v1344_v29, %v512_v46 }
  0x85   : > { %vm517_vm3 = vcmp.eq.f32.partialorder %v1302_v45, 0.0  ;;  %v569_v50 = vmul.f32 %v1458_v55, %v1335_v22  ;;  %v956_v16 = vpop.eup %955  ;;  %v518_v24 = vand.u32 2147483648, %v1302_v45  ;;  %v524_v21 = vsub.f32 1.5, %v523_v54 }
  0x86   : > { %v547_v61 = vmul.f32 0.5, %v546_v59  ;;  %v558_v26 = vmul.f32 %v952_v44, %v557_v60  ;;  %v536_v33 = vsub.f32 1.5, %v535_v57  ;;  %v581_v39 = vmul.f32 %v956_v16, %v1339_v25 }
  0x87   : > { %v570_v58 = vmul.f32 %v1458_v55, %v569_v50  ;;  %v610_v62 = vlaneseq  ;;  %v492_v29 = vsel %vm491_vm14, %v1271_v11, %v490_v52  ;;  %v502_v63 = vmul.f32 %v501_v56, %v1295_v37 }
  0x88   : > { %vm527_vm4 = vcmp.eq.f32.partialorder %v1324_v7, inf  ;;  %v530_v0 = vand.u32 2147483648, %v1324_v7  ;;  %v559_v2 = vmul.f32 0.5, %v558_v26  ;;  %v514_v3 = vmul.f32 %v513_v53, %v1302_v45 }
  0x89   : > { %v548_v4 = vsub.f32 1.5, %v547_v61  ;;  %v571_v5 = vmul.f32 0.5, %v570_v58  ;;  %v582_v8 = vmul.f32 %v956_v16, %v581_v39  ;;  %v525_v10 = vmul.f32 %v946_v13, %v524_v21 }
  0x8a   : > { %vm539_vm5 = vcmp.eq.f32.partialorder %v1327_v14, inf  ;;  %v542_v15 = vand.u32 2147483648, %v1327_v14  ;;  %vm551_vm6 = vcmp.eq.f32.partialorder %v1331_v19, inf  ;;  %vm529_vm7 = vcmp.eq.f32.partialorder %v1324_v7, 0.0 }
  0x8b   : > { %v537_v17 = vmul.f32 %v948_v18, %v536_v33  ;;  %vm541_vm8 = vcmp.eq.f32.partialorder %v1327_v14, 0.0  ;;  %v560_v32 = vsub.f32 1.5, %v559_v2  ;;  %v583_v23 = vmul.f32 0.5, %v582_v8 }
  0x8c   : > { %v611_v27 = vshrl.u32 %v610_v62, 7  ;;  %v1494_v13 = vsel %vm493_vm15, %v494_v6, %v492_v29  ;;  %v554_v30 = vand.u32 2147483648, %v1331_v19  ;;  %vm563_vm9 = vcmp.eq.f32.partialorder %v1333_v20, inf }
  0x8d   : > { %v566_v18 = vand.u32 2147483648, %v1333_v20  ;;  %v504_v31 = vsel %vm503_vm0, %v1295_v37, %v502_v63  ;;  %v516_v34 = vsel %vm515_vm1, %v1302_v45, %v514_v3  ;;  %v549_v11 = vmul.f32 %v1419_v41, %v548_v4 }
  0x8e   : > { %vm553_vm10 = vcmp.eq.f32.partialorder %v1331_v19, 0.0  ;;  %v572_v6 = vsub.f32 1.5, %v571_v5  ;;  %vm575_vm11 = vcmp.eq.f32.partialorder %v1335_v22, inf  ;;  %v578_v35 = vand.u32 2147483648, %v1335_v22 }
  0x8f   : > { %v584_v38 = vsub.f32 1.5, %v583_v23  ;;  %v1511_v46 = vadd.s32 8, %v611_v27  ;;  %v526_v12 = vmul.f32 %v525_v10, %v1324_v7  ;;  %v538_v36 = vmul.f32 %v537_v17, %v1327_v14 }
  0x90   : > { %v561_v40 = vmul.f32 %v952_v44, %v560_v32  ;;  %vm565_vm12 = vcmp.eq.f32.partialorder %v1333_v20, 0.0  ;;  %vm587_vm13 = vcmp.eq.f32.partialorder %v1339_v25, inf  ;;  %v1521_v41 = vsel %vm505_vm2, %v506_v48, %v504_v31 }
  0x91   : > { %v1525_v28 = vsel %vm517_vm3, %v518_v24, %v516_v34  ;;  %v590_v52 = vand.u32 2147483648, %v1339_v25  ;;  %v592_v54 = vmax.f32 %v1393_v9, 1e-10  ;;  %v550_v44 = vmul.f32 %v549_v11, %v1331_v19 }
  0x92   : > { %v573_v56 = vmul.f32 %v1458_v55, %v572_v6  ;;  %vm577_vm14 = vcmp.eq.f32.partialorder %v1335_v22, 0.0  ;;  %v593_v37 = vmax.f32 %v1425_v42, 1e-10  ;;  %v594_v48 = vmax.f32 %v1431_v1, 1e-10 }
  0x93   : > { %v585_v45 = vmul.f32 %v956_v16, %v584_v38  ;;  %vm589_vm15 = vcmp.eq.f32.partialorder %v1339_v25, 0.0  ;;  %v595_v57 = vmax.f32 %v1438_v51, 1e-10  ;;  %v596_v59 = vmax.f32 %v1451_v43, 1e-10 }
  0x94   : > { %vm620_vm0 = vcmp.ge.s32.totalorder %v1511_v46, 12  ;;  %v528_v9 = vsel %vm527_vm4, %v1324_v7, %v526_v12  ;;  %v540_v42 = vsel %vm539_vm5, %v1327_v14, %v538_v36  ;;  %v562_v1 = vmul.f32 %v561_v40, %v1333_v20 }
  0x95   : > { %v597_v55 = vmax.f32 %v1455_v49, 1e-10  ;;  %v598_v51 = vmax.f32 %v1465_v47, 1e-10  ;;  %v599_v43 = vmax.f32 %v1494_v13, 1e-10  ;;  %v645_v60 = vstv %s1499_s6 }
  0x96   : > { %v650_v53 = vstv %s1487_s5  ;;  %v552_v50 = vsel %vm551_vm6, %v1331_v19, %v550_v44  ;;  %v574_v16 = vmul.f32 %v573_v56, %v1335_v22  ;;  %vm616_vm1 = vcmp.lt.s32.totalorder %v1511_v46, 12 }
  0x97   : > { %v647_v24 = vsel %vm620_vm0, %v645_v60, 1.0  ;;  %v531_v49 = vsel %vm529_vm7, %v530_v0, %v528_v9  ;;  %v543_v47 = vsel %vm541_vm8, %v542_v15, %v540_v42  ;;  %v586_v21 = vmul.f32 %v585_v45, %v1339_v25 }
  0x98   : > { %v655_v61 = vadd.f32 %v650_v53, %v592_v54  ;;  %v564_v26 = vsel %vm563_vm9, %v1333_v20, %v562_v1  ;;  %v600_v33 = vmax.f32 %v1521_v41, 1e-10  ;;  %v601_v58 = vmax.f32 %v1525_v28, 1e-10 }
  0x99   : > { %v656_v39 = vadd.f32 %v650_v53, %v593_v37  ;;  %v555_v7 = vsel %vm553_vm10, %v554_v30, %v552_v50  ;;  %v614_v14 = vadd.s32 24, %v611_v27  ;;  %v652_v29 = vsel %vm616_vm1, %v650_v53, %v647_v24 }
  0x9a   : > { %v657_v63 = vadd.f32 %v650_v53, %v594_v48  ;;  %v576_v0 = vsel %vm575_vm11, %v1335_v22, %v574_v16  ;;  %v602_v2 = vmax.f32 %v531_v49, 1e-10  ;;  %v603_v3 = vmax.f32 %v543_v47, 1e-10 }
  0x9b   : > { %v658_v4 = vadd.f32 %v650_v53, %v595_v57  ;;  %v567_v5 = vsel %vm565_vm12, %v566_v18, %v564_v26  ;;  %v588_v19 = vsel %vm587_vm13, %v1339_v25, %v586_v21  ;;  %v659_v8 = vadd.f32 %v652_v29, %v596_v59 }
  0x9c   : > { %957 = vrcp.f32 %v655_v61  ;;  %v604_v10 = vmax.f32 %v555_v7, 1e-10  ;;  %v1585_v15 = vstv %s634_s9  ;;  %v660_v17 = vadd.f32 %v652_v29, %v597_v55 }
  0x9d   : > { %959 = vrcp.f32 %v656_v39  ;;  %v579_v32 = vsel %vm577_vm14, %v578_v35, %v576_v0  ;;  %vm626_vm2 = vcmp.lt.s32.totalorder %v614_v14, 28  ;;  %v661_v20 = vadd.f32 %v652_v29, %v598_v51 }
  0x9e   : > { %961 = vrcp.f32 %v657_v63  ;;  %v591_v23 = vsel %vm589_vm15, %v590_v52, %v588_v19  ;;  %v605_v27 = vmax.f32 %v567_v5, 1e-10  ;;  %v662_v13 = vadd.f32 %v652_v29, %v599_v43 }
  0x9f   : > { %963 = vrcp.f32 %v658_v4  ;;  %v637_v30 = vsel %vm620_vm0, %v1585_v15, 0.0  ;;  %v1596_v18 = vstv %s632_s14  ;;  %v663_v31 = vadd.f32 %v645_v60, %v600_v33 }
  0xa0   : > { %965 = vrcp.f32 %v659_v8  ;;  %v606_v34 = vmax.f32 %v579_v32, 1e-10  ;;  %v649_v22 = vsel %vm626_vm2, %v645_v60, 1.0  ;;  %v664_v11 = vadd.f32 %v645_v60, %v601_v58 }
  0xa1   : > { %967 = vrcp.f32 %v660_v17  ;;  %v607_v35 = vmax.f32 %v591_v23, 1e-10  ;;  %v1601_v25 = vsel %vm626_vm2, %v1585_v15, 0.0  ;;  %v665_v38 = vadd.f32 %v645_v60, %v602_v2 }
  0xa2   : > { %v958_v6 = vpop.eup %957  ;;  %969 = vrcp.f32 %v661_v20  ;;  %v1606_v36 = vsel %vm616_vm1, %v1596_v18, %v637_v30  ;;  %v666_v40 = vadd.f32 %v645_v60, %v603_v3  ;;  %v667_v52 = vadd.f32 %v649_v22, %v604_v10 }
  0xa3   : > { %v960_v12 = vpop.eup %959  ;;  %971 = vrcp.f32 %v662_v13  ;;  %v687_v41 = vmul.f32 %v958_v6, %v655_v61  ;;  %v668_v54 = vadd.f32 %v649_v22, %v605_v27  ;;  %v669_v37 = vadd.f32 %v649_v22, %v606_v34 }
  0xa4   : > { %v962_v28 = vpop.eup %961  ;;  %973 = vrcp.f32 %v663_v31  ;;  %v688_v44 = vmul.f32 %v960_v12, %v656_v39  ;;  %v670_v59 = vadd.f32 %v649_v22, %v607_v35  ;;  %vm794_vm3 = vcmask 1040384  }
  0xa5   : > { %v964_v56 = vpop.eup %963  ;;  %975 = vrcp.f32 %v664_v11  ;;  %v689_v48 = vmul.f32 %v962_v28, %v657_v63  ;;  %v703_v45 = vsub.f32 2.0, %v687_v41  ;;  %vm796_vm4 = vcmask 1042434  }
  0xa6   : > { %v966_v57 = vpop.eup %965  ;;  %977 = vrcp.f32 %v665_v38  ;;  %v690_v9 = vmul.f32 %v964_v56, %v658_v4  ;;  %v704_v46 = vsub.f32 2.0, %v688_v44  ;;  %vm798_vm5 = vcmask 1041408  }
  0xa7   : > { %v968_v42 = vpop.eup %967  ;;  %979 = vrcp.f32 %v666_v40  ;;  %v691_v1 = vmul.f32 %v966_v57, %v659_v8  ;;  %v705_v55 = vsub.f32 2.0, %v689_v48  ;;  %v719_v51 = vmul.f32 %v958_v6, %v703_v45 }
  0xa8   : > { %v970_v43 = vpop.eup %969  ;;  %981 = vrcp.f32 %v667_v52  ;;  %v692_v60 = vmul.f32 %v968_v42, %v660_v17  ;;  %v706_v53 = vsub.f32 2.0, %v690_v9  ;;  %v720_v50 = vmul.f32 %v960_v12, %v704_v46 }
  0xa9   : > { %v972_v16 = vpop.eup %971  ;;  %983 = vrcp.f32 %v668_v54  ;;  %v693_v24 = vmul.f32 %v970_v43, %v661_v20  ;;  %v707_v49 = vsub.f32 2.0, %v691_v1  ;;  %v721_v47 = vmul.f32 %v962_v28, %v705_v55 }
  0xaa   : > { %v974_v21 = vpop.eup %973  ;;  %985 = vrcp.f32 %v669_v37  ;;  %v694_v61 = vmul.f32 %v972_v16, %v662_v13  ;;  %v708_v26 = vsub.f32 2.0, %v692_v60  ;;  %v722_v33 = vmul.f32 %v964_v56, %v706_v53 }
  0xab   : > { %v976_v58 = vpop.eup %975  ;;  %987 = vrcp.f32 %v670_v59  ;;  %v695_v39 = vmul.f32 %v974_v21, %v663_v31  ;;  %v709_v7 = vsub.f32 2.0, %v693_v24  ;;  %v723_v14 = vmul.f32 %v966_v57, %v707_v49 }
  0xac   : > { %v978_v29 = vpop.eup %977  ;;  %v696_v63 = vmul.f32 %v976_v58, %v664_v11  ;;  %v710_v0 = vsub.f32 2.0, %v694_v61  ;;  %v724_v2 = vmul.f32 %v968_v42, %v708_v26  ;;  %v735_v3 = vmul.f32 %v719_v51, %v1596_v18 }
  0xad   : > { %v980_v4 = vpop.eup %979  ;;  %v697_v5 = vmul.f32 %v978_v29, %v665_v38  ;;  %v711_v19 = vsub.f32 2.0, %v695_v39  ;;  %v725_v8 = vmul.f32 %v970_v43, %v709_v7  ;;  %v736_v10 = vmul.f32 %v720_v50, %v1596_v18 }
  0xae   : > { %v982_v17 = vpop.eup %981  ;;  %v698_v32 = vmul.f32 %v980_v4, %v666_v40  ;;  %v712_v20 = vsub.f32 2.0, %v696_v63  ;;  %v726_v23 = vmul.f32 %v972_v16, %v710_v0  ;;  %v737_v27 = vmul.f32 %v721_v47, %v1596_v18 }
  0xaf   : > { %v984_v13 = vpop.eup %983  ;;  %v699_v30 = vmul.f32 %v982_v17, %v667_v52  ;;  %v713_v31 = vsub.f32 2.0, %v697_v5  ;;  %v727_v34 = vmul.f32 %v974_v21, %v711_v19  ;;  %v738_v22 = vmul.f32 %v722_v33, %v1596_v18 }
  0xb0   : > { %v986_v11 = vpop.eup %985  ;;  %v700_v6 = vmul.f32 %v984_v13, %v668_v54  ;;  %v714_v35 = vsub.f32 2.0, %v698_v32  ;;  %v728_v38 = vmul.f32 %v976_v58, %v712_v20  ;;  %v739_v12 = vmul.f32 %v723_v14, %v1606_v36 }
  0xb1   : > { %v988_v41 = vpop.eup %987  ;;  %v701_v28 = vmul.f32 %v986_v11, %v669_v37  ;;  %v715_v44 = vsub.f32 2.0, %v699_v30  ;;  %v729_v40 = vmul.f32 %v978_v29, %v713_v31  ;;  %v740_v56 = vmul.f32 %v724_v2, %v1606_v36 }
  0xb2   : > { %v702_v48 = vmul.f32 %v988_v41, %v670_v59  ;;  %v716_v45 = vsub.f32 2.0, %v700_v6  ;;  %v730_v57 = vmul.f32 %v980_v4, %v714_v35  ;;  %v741_v52 = vmul.f32 %v725_v8, %v1606_v36 }
  0xb3   : > { %v717_v9 = vsub.f32 2.0, %v701_v28  ;;  %v731_v46 = vmul.f32 %v982_v17, %v715_v44  ;;  %v742_v18 = vmul.f32 %v726_v23, %v1606_v36  ;;  %v743_v54 = vmul.f32 %v727_v34, %v1585_v15 }
  0xb4   : > { %v718_v42 = vsub.f32 2.0, %v702_v48  ;;  %v732_v1 = vmul.f32 %v984_v13, %v716_v45  ;;  %v744_v55 = vmul.f32 %v728_v38, %v1585_v15  ;;  %v745_v37 = vmul.f32 %v729_v40, %v1585_v15 }
  0xb5   : > { %v733_v51 = vmul.f32 %v986_v11, %v717_v9  ;;  %v746_v43 = vmul.f32 %v730_v57, %v1585_v15  ;;  %v747_v59 = vmul.f32 %v731_v46, %v1601_v25  ;;  %v751_v60 = vadd.f32 %v739_v12, %v735_v3 }
  0xb6   : > { %v734_v53 = vmul.f32 %v988_v41, %v718_v42  ;;  %v748_v50 = vmul.f32 %v732_v1, %v1601_v25  ;;  %v760_v16 = vadd.f32 %v740_v56, %v736_v10  ;;  %v769_v24 = vadd.f32 %v741_v52, %v737_v27 }
  0xb7   : > { %v749_v36 = vmul.f32 %v733_v51, %v1601_v25  ;;  %v752_v49 = vadd.f32 %v751_v60, %v743_v54  ;;  %v778_v47 = vadd.f32 %v742_v18, %v738_v22  ;;  %vm803_vm6 = vcmp.lt.s32.totalorder %v610_v62, 512 }
  0xb8   : > { %v750_v21 = vmul.f32 %v734_v53, %v1601_v25  ;;  %v761_v61 = vadd.f32 %v760_v16, %v744_v55  ;;  %v770_v26 = vadd.f32 %v769_v24, %v745_v37 }
  0xb9   : > { %v753_v33 = vadd.f32 %v752_v49, %v747_v59  ;;  %v779_v58 = vadd.f32 %v778_v47, %v746_v43 }
  0xba   : > { %v762_v15 = vadd.f32 %v761_v61, %v748_v50  ;;  %v771_v39 = vadd.f32 %v770_v26, %v749_v36 }
  0xbb   : > { %v754_v7 = vrot.slane %v753_v33, 4  ;;  %v780_v14 = vadd.f32 %v779_v58, %v750_v21 }
  0xbc   : > { %v763_v29 = vrot.slane %v762_v15, 4  ;;  %v772_v63 = vrot.slane %v771_v39, 4 }
  0xbd   : > { %v755_v0 = vadd.f32 %v754_v7, %v753_v33  ;;  %v781_v2 = vrot.slane %v780_v14, 4 }
  0xbe   : > { %v764_v3 = vadd.f32 %v763_v29, %v762_v15  ;;  %v773_v4 = vadd.f32 %v772_v63, %v771_v39 }
  0xbf   : > { %v756_v5 = vrot.slane %v755_v0, 2  ;;  %v782_v19 = vadd.f32 %v781_v2, %v780_v14 }
  0xc0   : > { %v765_v8 = vrot.slane %v764_v3, 2  ;;  %v774_v25 = vrot.slane %v773_v4, 2 }
  0xc1   : > { %v757_v10 = vadd.f32 %v756_v5, %v755_v0  ;;  %v783_v17 = vrot.slane %v782_v19, 2 }
  0xc2   : > { %v766_v32 = vadd.f32 %v765_v8, %v764_v3  ;;  %v775_v20 = vadd.f32 %v774_v25, %v773_v4 }
  0xc3   : > { %v758_v23 = vrot.slane %v757_v10, 1  ;;  %v784_v27 = vadd.f32 %v783_v17, %v782_v19 }
  0xc4   : > { %v767_v13 = vrot.slane %v766_v32, 1  ;;  %v776_v30 = vrot.slane %v775_v20, 1 }
  0xc5   : > { %v785_v31 = vrot.slane %v784_v27, 1  ;;  %v759_v34 = vadd.f32 %v758_v23, %v757_v10 }
  0xc6   : > { %v768_v22 = vadd.f32 %v767_v13, %v766_v32  ;;  %v777_v11 = vadd.f32 %v776_v30, %v775_v20 }
  0xc7   : > { %v786_v6 = vadd.f32 %v785_v31, %v784_v27 }
  0xc8   : > { %v791_v35 = vrot.slane %v768_v22, 7  ;;  %v792_v38 = vrot.slane %v777_v11, 6 }
  0xc9   : > { %v793_v12 = vrot.slane %v786_v6, 5 }
  0xca   : > { %v795_v41 = vsel %vm794_vm3, %v759_v34, %v791_v35 }
  0xcb   : > { %v797_v28 = vsel %vm796_vm4, %v792_v38, %v793_v12 }
  0xcc   : > { %v799_v44 = vsel %vm798_vm5, %v795_v41, %v797_v28 }
  0xcd   : > { %805 = vst.msk [vmem:[%s270_s17] sm:$0xf] %vm803_vm6, %v799_v44 }
  0xce PF: > { %p10_p12 = scmp.ge.s32.totalorder %s1065_s13, 4   ;;  %s1645_s9 = smov %s1026_s10 }
  0xcf   : > { %s1646_s10 = smov %s1075_s16  ;;  %s1647_s11 = smov %s1065_s13 }
  0xd0   :  { %12 = sbr.rel (!%p10_p12) target bundleno = 2 (0x2), region = 91 }
  0xd5   :  { %826 = vsyncpa [#allocation3], 1 }
  0xd6   :  { %828 = vsyncpa [#allocation3 + $0x1], 1 }

</bundles_post_ra>
